<compile_context>
chip_gen: v5e
topology: v5e:2x2
jax: 0.10.0
libtpu: 0.0.40
codegen_flags: <defaults>
</compile_context>

<pallas_src>
import jax
import jax.numpy as jnp
from jax import lax
from jax.experimental import pallas as pl
from jax.experimental.pallas import tpu as pltpu


_CH = 256  # lanes (samples) processed per inner-loop step; h chunk = 32 vregs


def _mlp_kernel(xT_ref, w1b_ref, w2r_ref, b2_ref, o_ref):
    # xT:  [F, tb]      w1b: [H, F+1] = [w1^T | b1]
    # w2r: [1, H]       b2:  SMEM (1,1) scalar       o: [1, tb]
    n_chunks = xT_ref.shape[1] // _CH

    w1b = w1b_ref[...]                               # hoisted MXU weights
    w2r = w2r_ref[...]                               # [1, H]
    b2 = b2_ref[0, 0]
    ones_row = jnp.ones((1, _CH), jnp.float32)       # hoisted (no per-iter bcast)

    def body(c, carry):
        off = pl.multiple_of(c * _CH, _CH)
        # Augment the x chunk with a ones row so the layer-1 bias rides the MXU.
        x_aug = jnp.concatenate(
            [xT_ref[:, pl.ds(off, _CH)], ones_row], axis=0)          # [F+1, CH]
        # Layer 1 (+bias) on the MXU, ReLU on the VPU.
        h = jnp.dot(w1b, x_aug, preferred_element_type=jnp.float32)  # [H, CH]
        h = jnp.maximum(h, 0.0)
        # Layer 2 (out_features == 1) also on the MXU -> lane-dense [1, CH].
        out = jnp.dot(w2r, h, preferred_element_type=jnp.float32)
        o_ref[:, pl.ds(off, _CH)] = out + b2
        return carry

    lax.fori_loop(0, n_chunks, body, None, unroll=True)


def baseline_network_forward(x, w1, b1, w2, b2, *, target_tile=16384,
                             x_is_transposed=False):
    """Forward pass of BaselineNetwork: relu(x @ w1 + b1) @ w2 + b2, squeezed.

    x : [B, F] float32 (or [F, B] if x_is_transposed=True — supplying the
        transposed layout upstream skips the wrapper-side transpose entirely).
    Weights are stored [F_in, F_out] (transposed vs. torch.nn.Linear):
      w1: [F, H], b1: [H], w2: [H, 1], b2: [1].  Returns [B] float32.
    """
    xT = x.astype(jnp.float32) if x_is_transposed else x.astype(jnp.float32).T
    F, B = xT.shape
    H = w1.shape[1]

    # Tile selection: ~target_tile samples per grid step (amortizes per-step
    # overhead), tile a multiple of the inner chunk, and >= 2 grid steps once
    # B exceeds one tile so v7x's two TensorCores share the batch.
    n_tiles = max(1, pl.cdiv(B, target_tile))
    tb = pl.cdiv(pl.cdiv(B, n_tiles), _CH) * _CH
    Bp = n_tiles * tb
    if Bp != B:
        xT = jnp.pad(xT, ((0, 0), (0, Bp - B)))      # zero columns; trimmed below

    w1b = jnp.concatenate(
        [w1.T.astype(jnp.float32), b1.reshape(H, 1).astype(jnp.float32)],
        axis=1)                                      # [H, F+1]   (bias folded)
    w2r = w2.astype(jnp.float32).reshape(1, H)       # [1, H]
    b2s = b2.astype(jnp.float32).reshape(1, 1)       # SMEM scalar

    out = pl.pallas_call(
        _mlp_kernel,
        out_shape=jax.ShapeDtypeStruct((1, Bp), jnp.float32),
        grid_spec=pltpu.PrefetchScalarGridSpec(
            num_scalar_prefetch=0,
            grid=(n_tiles,),
            in_specs=[
                pl.BlockSpec((F, tb), lambda i: (0, i)),         # xT: batch-tiled
                pl.BlockSpec((H, F + 1), lambda i: (0, 0)),      # [w1^T|b1] resident
                pl.BlockSpec((1, H), lambda i: (0, 0)),          # w2 row resident
                pl.BlockSpec(memory_space=pltpu.MemorySpace.SMEM),  # b2 scalar
            ],
            out_specs=pl.BlockSpec((1, tb), lambda i: (0, i)),   # lane-dense output
        ),
        compiler_params=pltpu.CompilerParams(
            dimension_semantics=("parallel",),   # v7x: shard batch tiles over 2 TCs
        ),
    )(xT, w1b, w2r, b2s)

    # (1, Bp) -> (Bp,) is a free metadata reshape; trim padding if any.
    return out.reshape(-1)[:B]


def init_params(key):
    """Deterministic init mirroring PyTorch's default Linear init
    (uniform in [-1/sqrt(fan_in), 1/sqrt(fan_in)]); weights stored [F_in, F_out]."""
    k1, k2, k3, k4 = jax.random.split(key, 4)
    bound1 = 1.0 / jnp.sqrt(4.0)
    bound2 = 1.0 / jnp.sqrt(128.0)
    w1 = jax.random.uniform(k1, (4, 128), jnp.float32, -bound1, bound1)
    b1 = jax.random.uniform(k2, (128,), jnp.float32, -bound1, bound1)
    w2 = jax.random.uniform(k3, (128, 1), jnp.float32, -bound2, bound2)
    b2 = jax.random.uniform(k4, (1,), jnp.float32, -bound2, bound2)
    return w1, b1, w2, b2


if __name__ == "__main__":
    key = jax.random.PRNGKey(0)
    k_params, k_x = jax.random.split(key)
    w1, b1, w2, b2 = init_params(k_params)

    B = 8  # small batch of 4-dim observations, consistent with Linear(4, ...)
    x = jax.random.normal(k_x, (B, 4), jnp.float32)

    y = baseline_network_forward(x, w1, b1, w2, b2)
    jax.block_until_ready(y)

    # Pure-JAX reference (same math, same params).
    y_ref = (jnp.maximum(x @ w1 + b1, 0.0) @ w2 + b2)[:, 0]
    assert y.shape == (B,), f"bad shape {y.shape}"
    assert jnp.allclose(y, y_ref, atol=1e-5), "mismatch vs reference"

    print("KERNEL_OK")
</pallas_src>

<mosaic_0001>
module attributes {stable_mosaic.version = 11 : i64} {
  func.func @_mlp_kernel(%arg0: i32, %arg1: memref<4x256xf32, #tpu.memory_space<vmem>>, %arg2: memref<128x5xf32, #tpu.memory_space<vmem>>, %arg3: memref<1x128xf32, #tpu.memory_space<vmem>>, %arg4: memref<1x1xf32, #tpu.memory_space<smem>>, %arg5: memref<1x256xf32, #tpu.memory_space<vmem>>) attributes {dimension_semantics = [#tpu.dimension_semantics<parallel>], iteration_bounds = array<i64: 1>, scalar_prefetch = 0 : i64, scratch_operands = 0 : i64, tpu.core_type = #tpu.core_type<tc>, window_params = [{transform_indices = @transform_0, window_bounds = array<i64: 4, 256>}, {pipeline_mode = #tpu.pipeline_mode<synchronous>, transform_indices = @transform_1, window_bounds = array<i64: 128, 5>}, {pipeline_mode = #tpu.pipeline_mode<synchronous>, transform_indices = @transform_2, window_bounds = array<i64: 1, 128>}, {transform_indices = @transform_3, window_bounds = array<i64: 1, 1>}, {transform_indices = @transform_4, window_bounds = array<i64: 1, 256>}]} {
    %c0 = arith.constant 0 : index
    %c0_0 = arith.constant 0 : index
    %0 = vector.load %arg2[%c0, %c0_0] : memref<128x5xf32, #tpu.memory_space<vmem>>, vector<128x5xf32>
    %c0_1 = arith.constant 0 : index
    %c0_2 = arith.constant 0 : index
    %1 = vector.load %arg3[%c0_1, %c0_2] : memref<1x128xf32, #tpu.memory_space<vmem>>, vector<1x128xf32>
    %c0_3 = arith.constant 0 : index
    %c0_4 = arith.constant 0 : index
    %2 = memref.load %arg4[%c0_3, %c0_4] : memref<1x1xf32, #tpu.memory_space<smem>>
    %cst = arith.constant 1.000000e+00 : f32
    %3 = vector.broadcast %cst : f32 to vector<1x256xf32>
    %c0_i32 = arith.constant 0 : i32
    %c256_i32 = arith.constant 256 : i32
    %4 = arith.muli %c0_i32, %c256_i32 : i32
    %5 = tpu.assume_multiple %4, 256 : i32
    %c0_5 = arith.constant 0 : index
    %6 = arith.index_cast %5 : i32 to index
    %7 = vector.load %arg1[%c0_5, %6] : memref<4x256xf32, #tpu.memory_space<vmem>>, vector<4x256xf32>
    %8 = tpu.concatenate %7, %3 in 0 : vector<4x256xf32>, vector<1x256xf32> -> vector<5x256xf32>
    %cst_6 = arith.constant dense<0.000000e+00> : vector<128x256xf32>
    %9 = tpu.matmul %0, %8, %cst_6 {dimension_numbers = #tpu.dot_dimension_numbers<[1], [0], [0], [1], [0, 0, 1, 1], [], []>} : vector<128x5xf32>, vector<5x256xf32>, vector<128x256xf32> -> vector<128x256xf32>
    %cst_7 = arith.constant 0.000000e+00 : f32
    %10 = vector.broadcast %cst_7 : f32 to vector<128x256xf32>
    %11 = arith.maximumf %9, %10 : vector<128x256xf32>
    %cst_8 = arith.constant dense<0.000000e+00> : vector<1x256xf32>
    %12 = tpu.matmul %1, %11, %cst_8 {dimension_numbers = #tpu.dot_dimension_numbers<[1], [0], [0], [1], [0, 0, 1, 1], [], []>} : vector<1x128xf32>, vector<128x256xf32>, vector<1x256xf32> -> vector<1x256xf32>
    %13 = vector.broadcast %2 : f32 to vector<1x256xf32>
    %14 = arith.addf %12, %13 : vector<1x256xf32>
    %c0_9 = arith.constant 0 : index
    %15 = arith.index_cast %5 : i32 to index
    %16 = vector.load %arg5[%c0_9, %15] : memref<1x256xf32, #tpu.memory_space<vmem>>, vector<1x256xf32>
    tpu.vector_store %arg5[%c0_9, %15], %14 {strides = array<i32>} : memref<1x256xf32, #tpu.memory_space<vmem>>, vector<1x256xf32>,
    %c1_i32 = arith.constant 1 : i32
    return
  }
  func.func @transform_0(%arg0: i32) -> (i32, i32) {
    %c0_i32 = arith.constant 0 : i32
    %c0_i32_0 = arith.constant 0 : i32
    return %c0_i32, %arg0 : i32, i32
  }
  func.func @transform_1(%arg0: i32) -> (i32, i32) {
    %c0_i32 = arith.constant 0 : i32
    %c0_i32_0 = arith.constant 0 : i32
    %c0_i32_1 = arith.constant 0 : i32
    return %c0_i32, %c0_i32_0 : i32, i32
  }
  func.func @transform_2(%arg0: i32) -> (i32, i32) {
    %c0_i32 = arith.constant 0 : i32
    %c0_i32_0 = arith.constant 0 : i32
    %c0_i32_1 = arith.constant 0 : i32
    return %c0_i32, %c0_i32_0 : i32, i32
  }
  func.func @transform_3(%arg0: i32) -> (i32, i32) {
    %c0_i32 = arith.constant 0 : i32
    %c0_i32_0 = arith.constant 0 : i32
    %c0_i32_1 = arith.constant 0 : i32
    return %c0_i32, %c0_i32_0 : i32, i32
  }
  func.func @transform_4(%arg0: i32) -> (i32, i32) {
    %c0_i32 = arith.constant 0 : i32
    %c0_i32_0 = arith.constant 0 : i32
    return %c0_i32, %arg0 : i32, i32
  }
}

</mosaic_0001>

<bundles_post_ra>
// kernel: tpu_custom_call.1
= control target key start
LH: loop header
LB: loop body
LE: loop exit
PB: predicated region body
PF: predicated region fallthrough
CT: control target
= control target key end

     0   :  { %s541_s0 = inlined_call_operand.vmem [shape: f32[4,256], index: 0, kind: input, shape index: {}]   ;;  %s542_s1 = inlined_call_operand.vmem [shape: f32[128,5], index: 1, kind: input, shape index: {}]   ;;  %s543_s2 = inlined_call_operand.vmem [shape: f32[1,128], index: 2, kind: input, shape index: {}]   ;;  %s544_s3 = inlined_call_operand.<no memory space> [shape: f32[1,1], index: 3, kind: input, shape index: {}]   ;;  %s545_s4 = inlined_call_operand.hbm [shape: f32[1,256], index: 4, kind: output, shape index: {}]  }
   0x1   :  { %v37_v0 = vld [vmem:[%s541_s0] sm:$0xff] }
   0x2   :  { %39 = vst [vmem:[#allocation1] ss:$2 sm:$0xff] %v37_v0 }
   0x3   :  { %10 = vsyncpa [#allocation4], 0  ;;  %vm44_vm0 = vcmask 1043456   ;;  %vm96_vm1 = vcmask 1044480   ;;  %v19_v1 = vld [vmem:[%s542_s1] sm:$0xff]  ;;  %vm47_vm2 = vcmask 39936  }
   0x4   :  { %v29_v6 = vld [vmem:[%s542_s1 + $0x50] sm:$0xff]  ;;  %v28_v7 = vld [vmem:[%s542_s1 + $0x48] sm:$0xff]  ;;  %v30_v9 = vld [vmem:[%s542_s1 + $0x58] sm:$0xff]  ;;  %s324_s27 = sshll.u32 %s545_s4, 4  ;;  %vm309_vm3 = vcmask 1040384   ;;  %s325_s27 = int_to_ptr.hbm [resolvable:$true] %s324_s27 }
   0x5   :  { %v20_v8 = vld [vmem:[%s542_s1 + $0x8] sm:$0xff]  ;;  %v21_v10 = vld [vmem:[%s542_s1 + $0x10] sm:$0xff]  ;;  %v31_v11 = vld [vmem:[%s542_s1 + $0x60] sm:$0xff] }
   0x6   :  { %v22_v12 = vld [vmem:[%s542_s1 + $0x18] sm:$0xff]  ;;  %v32_v13 = vld [vmem:[%s542_s1 + $0x68] sm:$0xff]  ;;  %v23_v14 = vld [vmem:[%s542_s1 + $0x20] sm:$0xff] }
   0x7   :  { %v33_v15 = vld [vmem:[%s542_s1 + $0x70] sm:$0xff]  ;;  %v24_v16 = vld [vmem:[%s542_s1 + $0x28] sm:$0xff]  ;;  %v34_v17 = vld [vmem:[%s542_s1 + $0x78] sm:$0xff] }
   0x8   :  { %v25_v18 = vld [vmem:[%s542_s1 + $0x30] sm:$0xff]  ;;  %v26_v19 = vld [vmem:[%s542_s1 + $0x38] sm:$0xff]  ;;  %v27_v20 = vld [vmem:[%s542_s1 + $0x40] sm:$0xff] }
   0x9   :  { %v40_v2 = vld.sshfl [vmem:[#allocation1] sm:$0xff pattern:$0x75316420]  ;;  %v41_v3 = vld.sshfl [vmem:[#allocation1 + $0x8] sm:$0xff pattern:$0x75316420] }
   0xa   :  { %v45_v4 = vsel %vm44_vm0, %v40_v2, 1.0  ;;  %v46_v5 = vsel %vm44_vm0, %v41_v3, 1.0 }
   0xb   :  { %333 = vmatpush.msk.msra.mxu0 %vm96_vm1, %v45_v4  ;;  %367 = vmatpush.msk.msra.mxu2 %vm96_vm1, %v45_v4 }
   0xc   :  { %368 = vmatpush.msk.msra.mxu3 %vm96_vm1, %v46_v5  ;;  %334 = vmatmul.msk.f32.vlgmr.msra.gmra.mxu0 %vm47_vm2, %v19_v1 }
   0xd   :  { %344 = vmatmul.msk.f32.vlgmr.msra.gmra.mxu2 %vm47_vm2, %v29_v6  ;;  %360 = vmatmul.msk.f32.vlgmr.msra.gmra.mxu3 %vm47_vm2, %v28_v7 }
   0xe   :  { %350 = vmatpush.msk.msra.mxu1 %vm96_vm1, %v46_v5 }
   0xf   :  { %351 = vmatmul.msk.f32.vlgmr.msra.gmra.mxu1 %vm47_vm2, %v19_v1 }
  0x14   :  { %335 = vmatmul.msk.f32.gmra.mxu0 %vm47_vm2, %v20_v8 }
  0x15   :  { %345 = vmatmul.msk.f32.gmra.mxu2 %vm47_vm2, %v30_v9  ;;  %361 = vmatmul.msk.f32.gmra.mxu3 %vm47_vm2, %v29_v6 }
  0x17   :  { %352 = vmatmul.msk.f32.gmra.mxu1 %vm47_vm2, %v20_v8 }
  0x1c   :  { %336 = vmatmul.msk.f32.gmra.mxu0 %vm47_vm2, %v21_v10 }
  0x1d   :  { %346 = vmatmul.msk.f32.gmra.mxu2 %vm47_vm2, %v31_v11  ;;  %362 = vmatmul.msk.f32.gmra.mxu3 %vm47_vm2, %v30_v9 }
  0x1f   :  { %353 = vmatmul.msk.f32.gmra.mxu1 %vm47_vm2, %v21_v10 }
  0x24   :  { %337 = vmatmul.msk.f32.gmra.mxu0 %vm47_vm2, %v22_v12 }
  0x25   :  { %347 = vmatmul.msk.f32.gmra.mxu2 %vm47_vm2, %v32_v13  ;;  %363 = vmatmul.msk.f32.gmra.mxu3 %vm47_vm2, %v31_v11 }
  0x27   :  { %354 = vmatmul.msk.f32.gmra.mxu1 %vm47_vm2, %v22_v12 }
  0x2c   :  { %338 = vmatmul.msk.f32.gmra.mxu0 %vm47_vm2, %v23_v14 }
  0x2d   :  { %348 = vmatmul.msk.f32.gmra.mxu2 %vm47_vm2, %v33_v15  ;;  %364 = vmatmul.msk.f32.gmra.mxu3 %vm47_vm2, %v32_v13 }
  0x2f   :  { %355 = vmatmul.msk.f32.gmra.mxu1 %vm47_vm2, %v23_v14 }
  0x34   :  { %339 = vmatmul.msk.f32.gmra.mxu0 %vm47_vm2, %v24_v16 }
  0x35   :  { %349 = vmatmul.msk.f32.gmra.mxu2 %vm47_vm2, %v34_v17  ;;  %365 = vmatmul.msk.f32.gmra.mxu3 %vm47_vm2, %v33_v15 }
  0x37   :  { %356 = vmatmul.msk.f32.gmra.mxu1 %vm47_vm2, %v24_v16 }
  0x3c   :  { %340 = vmatmul.msk.f32.gmra.mxu0 %vm47_vm2, %v25_v18 }
  0x3d   :  { %366 = vmatmul.msk.f32.gmra.mxu3 %vm47_vm2, %v34_v17 }
  0x3f   :  { %357 = vmatmul.msk.f32.gmra.mxu1 %vm47_vm2, %v25_v18  ;;  %v35_v18 = vld [vmem:[%s543_s2] sm:$0x1]  ;;  %s396_s2 = smov [#allocation3]  }
  0x40   :  { %s322_s24 = sshll.u32 %s396_s2, 4  ;;  %s323_s24 = int_to_ptr.vmem [resolvable:$true] %s322_s24 }
  0x44   :  { %341 = vmatmul.msk.f32.gmra.mxu0 %vm47_vm2, %v26_v19 }
  0x47   :  { %358 = vmatmul.msk.f32.gmra.mxu1 %vm47_vm2, %v26_v19 }
  0x4c   :  { %342 = vmatmul.msk.f32.gmra.mxu0 %vm47_vm2, %v27_v20 }
  0x4f   :  { %359 = vmatmul.msk.f32.gmra.mxu1 %vm47_vm2, %v27_v20 }
  0x54   :  { %343 = vmatmul.msk.f32.gmra.mxu0 %vm47_vm2, %v28_v7 }
  0x89   :  { %v505_v21 = vpop.f32.mrf.mxu0 }
  0x8c   :  { %v507_v22 = vpop.f32.mrf.mxu1 }
  0x8d   :  { %v234_v17 = vmax.f32 %v507_v22, 0.0  ;;  %v265_v22 = vstv %s544_s3 }
  0x90   :  { %v150_v23 = vpop.f32.mrf.mxu2  ;;  %v212_v24 = vpop.f32.mrf.mxu3 }
  0x91   :  { %v509_v25 = vpop.f32.mrf.mxu0  ;;  %v253_v55 = vmax.f32 %v150_v23, 0.0  ;;  %v252_v0 = vmax.f32 %v212_v24, 0.0  ;;  %v233_v23 = vmax.f32 %v505_v21, 0.0 }
  0x92   :  { %v235_v20 = vmax.f32 %v509_v25, 0.0 }
  0x94   :  { %v511_v26 = vpop.f32.mrf.mxu1 }
  0x95   :  { %v236_v15 = vmax.f32 %v511_v26, 0.0 }
  0x98   :  { %v153_v27 = vpop.f32.mrf.mxu2  ;;  %v215_v28 = vpop.f32.mrf.mxu3 }
  0x99   :  { %v513_v29 = vpop.f32.mrf.mxu0  ;;  %v255_v52 = vmax.f32 %v153_v27, 0.0  ;;  %v254_v62 = vmax.f32 %v215_v28, 0.0  ;;  %v312_v27 = vlaneseq }
  0x9a   :  { %v237_v19 = vmax.f32 %v513_v29, 0.0 }
  0x9b   :  { %vm314_vm4 = vcmp.lt.s32.totalorder %v312_v27, 256 }
  0x9c   :  { %v515_v30 = vpop.f32.mrf.mxu1 }
  0x9d   :  { %v238_v13 = vmax.f32 %v515_v30, 0.0 }
  0xa0   :  { %v156_v31 = vpop.f32.mrf.mxu2  ;;  %v218_v32 = vpop.f32.mrf.mxu3 }
  0xa1   :  { %v517_v33 = vpop.f32.mrf.mxu0  ;;  %v257_v50 = vmax.f32 %v156_v31, 0.0  ;;  %v256_v60 = vmax.f32 %v218_v32, 0.0 }
  0xa2   :  { %v239_v16 = vmax.f32 %v517_v33, 0.0 }
  0xa4   :  { %v519_v34 = vpop.f32.mrf.mxu1 }
  0xa5   :  { %v240_v11 = vmax.f32 %v519_v34, 0.0 }
  0xa8   :  { %v159_v35 = vpop.f32.mrf.mxu2  ;;  %v221_v36 = vpop.f32.mrf.mxu3 }
  0xa9   :  { %v521_v37 = vpop.f32.mrf.mxu0  ;;  %v259_v49 = vmax.f32 %v159_v35, 0.0  ;;  %v258_v59 = vmax.f32 %v221_v36, 0.0 }
  0xaa   :  { %v241_v14 = vmax.f32 %v521_v37, 0.0 }
  0xac   :  { %v197_v38 = vpop.f32.mrf.mxu1 }
  0xad   :  { %v242_v9 = vmax.f32 %v197_v38, 0.0 }
  0xb0   :  { %v162_v39 = vpop.f32.mrf.mxu2  ;;  %v224_v40 = vpop.f32.mrf.mxu3 }
  0xb1   :  { %v135_v41 = vpop.f32.mrf.mxu0  ;;  %v261_v45 = vmax.f32 %v162_v39, 0.0  ;;  %v260_v58 = vmax.f32 %v224_v40, 0.0 }
  0xb2   :  { %v243_v12 = vmax.f32 %v135_v41, 0.0 }
  0xb4   :  { %v200_v42 = vpop.f32.mrf.mxu1 }
  0xb5   :  { %v244_v7 = vmax.f32 %v200_v42, 0.0 }
  0xb8   :  { %v165_v43 = vpop.f32.mrf.mxu2  ;;  %v227_v44 = vpop.f32.mrf.mxu3 }
  0xb9   :  { %v263_v46 = vmax.f32 %v165_v43, 0.0  ;;  %v138_v47 = vpop.f32.mrf.mxu0  ;;  %v262_v56 = vmax.f32 %v227_v44, 0.0 }
  0xba   :  { %v245_v10 = vmax.f32 %v138_v47, 0.0 }
  0xbb   :  { %266 = vmatpush.msrb.mxu2 %v263_v46 }
  0xbc   :  { %v203_v48 = vpop.f32.mrf.mxu1 }
  0xbd   :  { %267 = vmatpush.msrb.mxu2 %v261_v45  ;;  %v246_v5 = vmax.f32 %v203_v48, 0.0 }
  0xbf   :  { %268 = vmatpush.msrb.mxu2 %v259_v49 }
  0xc0   :  { %v230_v51 = vpop.f32.mrf.mxu3 }
  0xc1   :  { %v264_v53 = vmax.f32 %v230_v51, 0.0  ;;  %269 = vmatpush.msrb.mxu2 %v257_v50  ;;  %v141_v54 = vpop.f32.mrf.mxu0 }
  0xc2   :  { %v247_v8 = vmax.f32 %v141_v54, 0.0 }
  0xc3   :  { %270 = vmatpush.msrb.mxu2 %v255_v52  ;;  %286 = vmatpush.msrb.mxu3 %v264_v53 }
  0xc4   :  { %v206_v57 = vpop.f32.mrf.mxu1 }
  0xc5   :  { %271 = vmatpush.msrb.mxu2 %v253_v55  ;;  %287 = vmatpush.msrb.mxu3 %v262_v56  ;;  %v248_v2 = vmax.f32 %v206_v57, 0.0 }
  0xc7   :  { %288 = vmatpush.msrb.mxu3 %v260_v58 }
  0xc9   :  { %289 = vmatpush.msrb.mxu3 %v258_v59  ;;  %v144_v61 = vpop.f32.mrf.mxu0 }
  0xca   :  { %v249_v6 = vmax.f32 %v144_v61, 0.0 }
  0xcb   :  { %290 = vmatpush.msrb.mxu3 %v256_v60 }
  0xcc   :  { %v209_v63 = vpop.f32.mrf.mxu1 }
  0xcd   :  { %291 = vmatpush.msrb.mxu3 %v254_v62  ;;  %v250_v1 = vmax.f32 %v209_v63, 0.0 }
  0xcf   :  { %292 = vmatpush.msrb.mxu3 %v252_v0 }
  0xd1   :  { %293 = vmatpush.msrb.mxu3 %v250_v1  ;;  %v147_v3 = vpop.f32.mrf.mxu0 }
  0xd2   :  { %v251_v4 = vmax.f32 %v147_v3, 0.0 }
  0xd3   :  { %294 = vmatpush.msrb.mxu3 %v248_v2 }
  0xd4   :  { %272 = vmatpush.msrb.mxu2 %v251_v4 }
  0xd5   :  { %295 = vmatpush.msrb.mxu3 %v246_v5 }
  0xd6   :  { %273 = vmatpush.msrb.mxu2 %v249_v6 }
  0xd7   :  { %296 = vmatpush.msrb.mxu3 %v244_v7 }
  0xd8   :  { %274 = vmatpush.msrb.mxu2 %v247_v8 }
  0xd9   :  { %297 = vmatpush.msrb.mxu3 %v242_v9 }
  0xda   :  { %275 = vmatpush.msrb.mxu2 %v245_v10 }
  0xdb   :  { %298 = vmatpush.msrb.mxu3 %v240_v11 }
  0xdc   :  { %276 = vmatpush.msrb.mxu2 %v243_v12 }
  0xdd   :  { %299 = vmatpush.msrb.mxu3 %v238_v13 }
  0xde   :  { %277 = vmatpush.msrb.mxu2 %v241_v14 }
  0xdf   :  { %300 = vmatpush.msrb.mxu3 %v236_v15 }
  0xe0   :  { %278 = vmatpush.msrb.mxu2 %v239_v16 }
  0xe1   :  { %301 = vmatpush.msrb.mxu3 %v234_v17 }
  0xe2   :  { %279 = vmatpush.msrb.mxu2 %v237_v19  ;;  %302 = vmatmul.f32.vlgmr.msrb.gmra.mxu3 %v35_v18 }
  0xe4   :  { %280 = vmatpush.msrb.mxu2 %v235_v20 }
  0xe6   :  { %281 = vmatpush.msrb.mxu2 %v233_v23 }
  0xe7   :  { %282 = vmatmul.f32.vlgmr.msrb.gmra.mxu2 %v35_v18 }
 0x165   :  { %v303_v24 = vpop.f32.mrf.mxu3 }
 0x166   :  { %v304_v26 = vadd.f32 %v303_v24, %v265_v22 }
 0x168   :  { %v308_v28 = vrot.slane %v304_v26, 7 }
 0x16a   :  { %v283_v25 = vpop.f32.mrf.mxu2 }
 0x16b   :  { %v284_v21 = vadd.f32 %v283_v25, %v265_v22 }
 0x16d   :  { %v310_v29 = vsel %vm309_vm3, %v284_v21, %v308_v28 }
 0x16e   :  { %316 = vst.msk [vmem:[#allocation3] sm:$0x3] %vm314_vm4, %v310_v29 }
 0x16f   :  { %327 = dma.vmem_to_hbm [thread:$0]  %s323_s24, 32, %s325_s27, [#allocation4]  }
 0x170   :  { %394 = dma.done.wait [#allocation4], 32  }
 0x171   :  { %395 = vsyncadd [#allocation4], 4294967264 }
 0x172   :  { %332 = vsyncpa [#allocation4], 1 }

</bundles_post_ra>
